<compile_context>
chip_gen: v5e
topology: v5e:2x2
jax: 0.10.0
libtpu: 0.0.40
codegen_flags: <defaults>
</compile_context>

<pallas_src>
import functools

import jax
import jax.numpy as jnp
from jax.experimental import pallas as pl
from jax.experimental.pallas import tpu as pltpu

HIDDEN_SIZE = 32
_SUBLANE = 8


def _round_up(n, m):
    return ((n + m - 1) // m) * m


def actor_critic_kernel(x_ref, w1_ref, b1_ref, wh_ref, bh_ref, out_ref):
    # Hidden layer: ReLU(x @ W1 + b1).  x is cast to the weight (compute) dtype here,
    # under the DMA, so no extra HBM pass is needed in the wrapper.  MXU accumulates
    # in f32; bias add + ReLU stay f32 on the VPU.
    w1 = w1_ref[...]
    x = x_ref[...].astype(w1.dtype)
    h = jnp.dot(x, w1, preferred_element_type=jnp.float32)
    h = jnp.maximum(h + b1_ref[...], 0.0)

    # Fused heads: one (H, 8) matmul covering [action_scores | state_value | zero pad],
    # stored as a single narrow (tile_b, 8) f32 tile.
    wh = wh_ref[...]
    y = jnp.dot(h.astype(wh.dtype), wh, preferred_element_type=jnp.float32)
    out_ref[...] = (y + bh_ref[...]).astype(out_ref.dtype)


def prepare_params(params, compute_dtype=jnp.float32):
    """One-time params prep (hoisted out of the per-call forward):
    fuse the action/value heads into a single sublane-aligned matrix and cast weights."""
    out_channels = params["wa"].shape[1]
    n_head = out_channels + 1                       # [action_scores | state_value]
    n_out = _round_up(n_head, _SUBLANE)             # narrow, sublane-aligned head width (8)
    w_head = jnp.concatenate([params["wa"], params["wv"]], axis=1)
    b_head = jnp.concatenate([params["ba"], params["bv"]], axis=1)
    w_head = jnp.pad(w_head, ((0, 0), (0, n_out - n_head)))
    b_head = jnp.pad(b_head, ((0, 0), (0, n_out - n_head)))
    prepped = {
        "w1": params["w1"].astype(compute_dtype),
        "b1": params["b1"].astype(jnp.float32),      # elementwise work stays f32
        "w_head": w_head.astype(compute_dtype),
        "b_head": b_head.astype(jnp.float32),
    }
    return prepped, out_channels


@functools.partial(jax.jit, static_argnames=("out_channels", "tile_b"))
def actor_critic_forward(x, prepped, *, out_channels, tile_b=None):
    """Forward pass. Returns (action_scores (B, out_channels), state_values (B, 1))."""
    B, in_features = x.shape
    w1, b1 = prepped["w1"], prepped["b1"]
    w_head, b_head = prepped["w_head"], prepped["b_head"]
    hidden = w1.shape[1]
    n_out = w_head.shape[1]

    # --- Batch tiling ------------------------------------------------------------
    # Default: aim for >= 2 grid steps (v7x: both TensorCores get a share of the
    # "parallel" batch axis), cap at 4096 rows per tile.  No padding of x: the grid
    # is ceil(B / tile_b) and Pallas masks the ragged last block (rows independent,
    # out-of-range rows never stored).
    if tile_b is None:
        tile_b = min(4096, _round_up(pl.cdiv(B, 2), _SUBLANE))
    tile_b = max(_SUBLANE, _round_up(int(tile_b), _SUBLANE))
    tile_b = min(tile_b, _round_up(B, _SUBLANE))
    grid = (pl.cdiv(B, tile_b),)

    cost = pl.CostEstimate(
        flops=2 * B * (in_features * hidden + hidden * n_out),
        transcendentals=0,
        bytes_accessed=(B * in_features * x.dtype.itemsize          # x read
                        + B * n_out * 4                              # out write
                        + w1.size * w1.dtype.itemsize + b1.size * 4
                        + w_head.size * w_head.dtype.itemsize + b_head.size * 4),
    )

    const = lambda a: pl.BlockSpec(a.shape, lambda i: (0, 0))        # resident in VMEM

    out = pl.pallas_call(
        actor_critic_kernel,
        out_shape=jax.ShapeDtypeStruct((B, n_out), jnp.float32),
        grid=grid,
        in_specs=[
            pl.BlockSpec((tile_b, in_features), lambda i: (i, 0)),   # x: streamed per tile
            const(w1), const(b1), const(w_head), const(b_head),      # params: pinned
        ],
        out_specs=pl.BlockSpec((tile_b, n_out), lambda i: (i, 0)),
        compiler_params=pltpu.CompilerParams(
            dimension_semantics=("parallel",)),                      # v7x: split batch tiles
        cost_estimate=cost,
    )(x, w1, b1, w_head, b_head)

    action_scores = out[:, :out_channels]
    state_values = out[:, out_channels:out_channels + 1]
    return action_scores, state_values


def init_params(key, in_channels, out_channels, hidden=HIDDEN_SIZE):
    """Deterministic PyTorch-Linear-style init: U(-1/sqrt(fan_in), 1/sqrt(fan_in))."""
    ks = jax.random.split(key, 6)

    def uniform(k, shape, fan_in):
        bound = 1.0 / jnp.sqrt(jnp.float32(fan_in))
        return jax.random.uniform(k, shape, jnp.float32, -bound, bound)

    return {
        "w1": uniform(ks[0], (in_channels, hidden), in_channels),
        "b1": uniform(ks[1], (1, hidden), in_channels),
        "wa": uniform(ks[2], (hidden, out_channels), hidden),
        "ba": uniform(ks[3], (1, out_channels), hidden),
        "wv": uniform(ks[4], (hidden, 1), hidden),
        "bv": uniform(ks[5], (1, 1), hidden),
    }


if __name__ == "__main__":
    key = jax.random.PRNGKey(0)
    k_params, k_x, k_big = jax.random.split(key, 3)

    batch = 8
    in_channels = 16      # feature dim of an encoded Taxi-v2 state
    out_channels = 6      # Taxi-v2 has 6 discrete actions

    params = init_params(k_params, in_channels, out_channels)
    x = jax.random.normal(k_x, (batch, in_channels), jnp.float32)

    # One-time prep (fused heads, casts) — f32 path matches the plain-JAX reference.
    prepped_f32, oc = prepare_params(params, jnp.float32)

    action_scores, state_values = actor_critic_forward(x, prepped_f32, out_channels=oc)
    jax.block_until_ready((action_scores, state_values))

    h_ref = jnp.maximum(x @ params["w1"] + params["b1"], 0.0)
    act_ref = h_ref @ params["wa"] + params["ba"]
    val_ref = h_ref @ params["wv"] + params["bv"]

    assert action_scores.shape == (batch, out_channels)
    assert state_values.shape == (batch, 1)
    assert jnp.allclose(action_scores, act_ref, atol=1e-5)
    assert jnp.allclose(state_values, val_ref, atol=1e-5)

    # Odd batch size: exercises the ragged (masked) last-block path, no padding done.
    act_odd, val_odd = actor_critic_forward(x[:3], prepped_f32, out_channels=oc)
    jax.block_until_ready((act_odd, val_odd))
    assert jnp.allclose(act_odd, act_ref[:3], atol=1e-5)
    assert jnp.allclose(val_odd, val_ref[:3], atol=1e-5)

    # Larger batch: multi-tile grid (2 steps -> both TCs on v7x) + ragged last tile.
    xb = jax.random.normal(k_big, (1000, in_channels), jnp.float32)
    act_b, val_b = actor_critic_forward(xb, prepped_f32, out_channels=oc)
    jax.block_until_ready((act_b, val_b))
    hb = jnp.maximum(xb @ params["w1"] + params["b1"], 0.0)
    assert jnp.allclose(act_b, hb @ params["wa"] + params["ba"], atol=1e-5)
    assert jnp.allclose(val_b, hb @ params["wv"] + params["bv"], atol=1e-5)

    # bf16 MXU operands with f32 accumulation (perf path; x cast happens in-kernel).
    # Note: keep the f32 prepped params if the critic head is sensitive during training.
    prepped_bf16, _ = prepare_params(params, jnp.bfloat16)
    act_bf, val_bf = actor_critic_forward(x, prepped_bf16, out_channels=oc)
    jax.block_until_ready((act_bf, val_bf))
    assert jnp.allclose(act_bf, act_ref, atol=5e-2)
    assert jnp.allclose(val_bf, val_ref, atol=5e-2)

    print("KERNEL_OK")
</pallas_src>

<mosaic_0001>
module attributes {stable_mosaic.version = 11 : i64} {
  func.func @actor_critic_kernel(%arg0: i32, %arg1: memref<8x16xf32, #tpu.memory_space<vmem>>, %arg2: memref<16x32xf32, #tpu.memory_space<vmem>>, %arg3: memref<1x32xf32, #tpu.memory_space<vmem>>, %arg4: memref<32x8xf32, #tpu.memory_space<vmem>>, %arg5: memref<1x8xf32, #tpu.memory_space<vmem>>, %arg6: memref<8x8xf32, #tpu.memory_space<vmem>>) attributes {dimension_semantics = [#tpu.dimension_semantics<parallel>], iteration_bounds = array<i64: 1>, scalar_prefetch = 0 : i64, scratch_operands = 0 : i64, tpu.core_type = #tpu.core_type<tc>, window_params = [{transform_indices = @transform_0, window_bounds = array<i64: 8, 16>}, {pipeline_mode = #tpu.pipeline_mode<synchronous>, transform_indices = @transform_1, window_bounds = array<i64: 16, 32>}, {pipeline_mode = #tpu.pipeline_mode<synchronous>, transform_indices = @transform_2, window_bounds = array<i64: 1, 32>}, {pipeline_mode = #tpu.pipeline_mode<synchronous>, transform_indices = @transform_3, window_bounds = array<i64: 32, 8>}, {pipeline_mode = #tpu.pipeline_mode<synchronous>, transform_indices = @transform_4, window_bounds = array<i64: 1, 8>}, {transform_indices = @transform_5, window_bounds = array<i64: 8, 8>}]} {
    %c0 = arith.constant 0 : index
    %c0_0 = arith.constant 0 : index
    %0 = vector.load %arg2[%c0, %c0_0] : memref<16x32xf32, #tpu.memory_space<vmem>>, vector<16x32xf32>
    %c0_1 = arith.constant 0 : index
    %c0_2 = arith.constant 0 : index
    %1 = vector.load %arg1[%c0_1, %c0_2] : memref<8x16xf32, #tpu.memory_space<vmem>>, vector<8x16xf32>
    %cst = arith.constant dense<0.000000e+00> : vector<8x32xf32>
    %2 = tpu.matmul %1, %0, %cst {dimension_numbers = #tpu.dot_dimension_numbers<[1], [0], [0], [1], [0, 0, 1, 1], [], []>} : vector<8x16xf32>, vector<16x32xf32>, vector<8x32xf32> -> vector<8x32xf32>
    %c0_3 = arith.constant 0 : index
    %c0_4 = arith.constant 0 : index
    %3 = vector.load %arg3[%c0_3, %c0_4] : memref<1x32xf32, #tpu.memory_space<vmem>>, vector<1x32xf32>
    %4 = vector.broadcast %3 : vector<1x32xf32> to vector<8x32xf32>
    %5 = arith.addf %2, %4 : vector<8x32xf32>
    %cst_5 = arith.constant 0.000000e+00 : f32
    %6 = vector.broadcast %cst_5 : f32 to vector<8x32xf32>
    %7 = arith.maximumf %5, %6 : vector<8x32xf32>
    %c0_6 = arith.constant 0 : index
    %c0_7 = arith.constant 0 : index
    %8 = vector.load %arg4[%c0_6, %c0_7] : memref<32x8xf32, #tpu.memory_space<vmem>>, vector<32x8xf32>
    %cst_8 = arith.constant dense<0.000000e+00> : vector<8x8xf32>
    %9 = tpu.matmul %7, %8, %cst_8 {dimension_numbers = #tpu.dot_dimension_numbers<[1], [0], [0], [1], [0, 0, 1, 1], [], []>} : vector<8x32xf32>, vector<32x8xf32>, vector<8x8xf32> -> vector<8x8xf32>
    %c0_9 = arith.constant 0 : index
    %c0_10 = arith.constant 0 : index
    %10 = vector.load %arg5[%c0_9, %c0_10] : memref<1x8xf32, #tpu.memory_space<vmem>>, vector<1x8xf32>
    %11 = vector.broadcast %10 : vector<1x8xf32> to vector<8x8xf32>
    %12 = arith.addf %9, %11 : vector<8x8xf32>
    %c0_11 = arith.constant 0 : index
    %c0_12 = arith.constant 0 : index
    %13 = vector.load %arg6[%c0_11, %c0_12] : memref<8x8xf32, #tpu.memory_space<vmem>>, vector<8x8xf32>
    tpu.vector_store %arg6[%c0_11, %c0_12], %12 {strides = array<i32>} : memref<8x8xf32, #tpu.memory_space<vmem>>, vector<8x8xf32>,
    return
  }
  func.func @transform_0(%arg0: i32) -> (i32, i32) {
    %c0_i32 = arith.constant 0 : i32
    %c0_i32_0 = arith.constant 0 : i32
    return %arg0, %c0_i32 : i32, i32
  }
  func.func @transform_1(%arg0: i32) -> (i32, i32) {
    %c0_i32 = arith.constant 0 : i32
    %c0_i32_0 = arith.constant 0 : i32
    %c0_i32_1 = arith.constant 0 : i32
    return %c0_i32, %c0_i32_0 : i32, i32
  }
  func.func @transform_2(%arg0: i32) -> (i32, i32) {
    %c0_i32 = arith.constant 0 : i32
    %c0_i32_0 = arith.constant 0 : i32
    %c0_i32_1 = arith.constant 0 : i32
    return %c0_i32, %c0_i32_0 : i32, i32
  }
  func.func @transform_3(%arg0: i32) -> (i32, i32) {
    %c0_i32 = arith.constant 0 : i32
    %c0_i32_0 = arith.constant 0 : i32
    %c0_i32_1 = arith.constant 0 : i32
    return %c0_i32, %c0_i32_0 : i32, i32
  }
  func.func @transform_4(%arg0: i32) -> (i32, i32) {
    %c0_i32 = arith.constant 0 : i32
    %c0_i32_0 = arith.constant 0 : i32
    %c0_i32_1 = arith.constant 0 : i32
    return %c0_i32, %c0_i32_0 : i32, i32
  }
  func.func @transform_5(%arg0: i32) -> (i32, i32) {
    %c0_i32 = arith.constant 0 : i32
    %c0_i32_0 = arith.constant 0 : i32
    return %arg0, %c0_i32 : i32, i32
  }
}

</mosaic_0001>

<bundles_post_ra>
// kernel: actor_critic_forward.1
= control target key start
LH: loop header
LB: loop body
LE: loop exit
PB: predicated region body
PF: predicated region fallthrough
CT: control target
= control target key end

     0   :  { %vm27_vm0 = vcmask 130048   ;;  %vm60_vm1 = vcmask 261120   ;;  %vm84_vm2 = vcmask 64512   ;;  %s154_s1 = inlined_call_operand.vmem [shape: f32[16,32], index: 1, kind: input, shape index: {}]   ;;  %s155_s0 = inlined_call_operand.vmem [shape: f32[8,16], index: 0, kind: input, shape index: {}]   ;;  %s156_s3 = inlined_call_operand.vmem [shape: f32[32,8], index: 3, kind: input, shape index: {}]   ;;  %s157_s2 = inlined_call_operand.vmem [shape: f32[1,32], index: 2, kind: input, shape index: {}]   ;;  %s158_s4 = inlined_call_operand.vmem [shape: f32[1,8], index: 4, kind: input, shape index: {}]   ;;  %s159_s5 = inlined_call_operand.vmem [shape: f32[8,8], index: 5, kind: output, shape index: {}]  }
   0x1   :  { %v21_v0 = vld [vmem:[%s154_s1 + $0x8] sm:$0xff]  ;;  %v20_v1 = vld [vmem:[%s154_s1] sm:$0xff]  ;;  %v55_v3 = vld [vmem:[%s156_s3 + $0x18] sm:$0xff] }
   0x2   :  { %45 = vmatpush.msra.mxu0 %v21_v0  ;;  %v22_v2 = vld [vmem:[%s155_s0] sm:$0xff]  ;;  %76 = vmatpush.msra.mxu1 %v55_v3  ;;  %v54_v4 = vld [vmem:[%s156_s3 + $0x10] sm:$0xff]  ;;  %v53_v5 = vld [vmem:[%s156_s3 + $0x8] sm:$0xff] }
   0x3   :  { %v52_v6 = vld [vmem:[%s156_s3] sm:$0xff] }
   0x4   :  { %46 = vmatpush.msra.mxu0 %v20_v1  ;;  %77 = vmatpush.msra.mxu1 %v54_v4  ;;  %v92_v7 = vld [vmem:[%s157_s2] ss:$0 sm:$0xff] }
   0x5   :  { %90 = vmatmul.msk.f32.vlgmr.msra.gmra.mxu0 %vm27_vm0, %v22_v2  ;;  %v93_v11 = vld [vmem:[%s158_s4] ss:$0 sm:$0xff] }
   0x6   :  { %78 = vmatpush.msra.mxu1 %v53_v5 }
   0x8   :  { %79 = vmatpush.msra.mxu1 %v52_v6 }
  0x82   :  { %v48_v8 = vpop.f32.mrf.mxu0 }
  0x83   :  { %v49_v9 = vadd.f32 %v92_v7, %v48_v8 }
  0x85   :  { %v51_v10 = vmax.f32 %v49_v9, 0.0 }
  0x87   :  { %91 = vmatmul.msk.f32.vlgmr.msra.gmra.mxu1 %vm60_vm1, %v51_v10 }
 0x104   :  { %v81_v12 = vpop.f32.mrf.mxu1 }
 0x105   :  { %v82_v13 = vadd.f32 %v93_v11, %v81_v12 }
 0x107   :  { %85 = vst.msk [vmem:[%s159_s5] sm:$0xff] %vm84_vm2, %v82_v13 }

</bundles_post_ra>
